<compile_context>
chip_gen: v6e
topology: v6e:2x2x1
jax: 0.10.0
libtpu: 0.0.40
codegen_flags: <defaults>
</compile_context>

<pallas_src>
import jax
import jax.numpy as jnp
from jax.experimental import pallas as pl
from jax.experimental.pallas import tpu as pltpu

IN_DIM = 28 * 28      # 784 (multiple of 8, NOT padded to a lane multiple)
H1 = 120
H2 = 84
OUT_DIM = 10

H1_PAD = 128          # lane-padded feature widths (zero-padded -> exact math)
H2_PAD = 128
OUT_PAD = 128

BATCH = 10            # matches the PyTorch spec's example input


def _round_up(n, m):
    return ((n + m - 1) // m) * m


def _pad2d(a, rows, cols):
    return jnp.pad(a, ((0, rows - a.shape[0]), (0, cols - a.shape[1])))


def mlp_kernel(x_ref, w1_ref, b1_ref, w2_ref, b2_ref, w3_ref, b3_ref, o_ref):
    # bf16 MXU operands, f32 accumulation; bias add + ReLU in f32 on the VPU.
    x = x_ref[...].astype(jnp.bfloat16)
    h1 = jnp.dot(x, w1_ref[...], preferred_element_type=jnp.float32)
    h1 = jnp.maximum(h1 + b1_ref[...], 0.0)
    h2 = jnp.dot(h1.astype(jnp.bfloat16), w2_ref[...],
                 preferred_element_type=jnp.float32)
    h2 = jnp.maximum(h2 + b2_ref[...], 0.0)
    h3 = jnp.dot(h2.astype(jnp.bfloat16), w3_ref[...],
                 preferred_element_type=jnp.float32)
    o_ref[...] = (h3 + b3_ref[...]).astype(o_ref.dtype)


def prepare_params(w1, b1, w2, b2, w3, b3):
    """One-time preprocessing: lane-pad out-features, cast weights to bf16.

    Weights are stored (in_features, out_features) (transposed vs. PyTorch) so
    the hot path is x @ W + b on the MXU.  W1 keeps its K dim at 784 (Mosaic
    pads the contracting dim internally in VMEM); padded rows/cols are zero so
    the math is exact for the real 120/84/10 outputs.
    """
    w1p = _pad2d(w1, IN_DIM, H1_PAD).astype(jnp.bfloat16)     # (784, 128)
    w2p = _pad2d(w2, H1_PAD, H2_PAD).astype(jnp.bfloat16)     # (128, 128)
    w3p = _pad2d(w3, H2_PAD, OUT_PAD).astype(jnp.bfloat16)    # (128, 128)
    b1p = _pad2d(b1.reshape(1, -1), 1, H1_PAD).astype(jnp.float32)
    b2p = _pad2d(b2.reshape(1, -1), 1, H2_PAD).astype(jnp.float32)
    b3p = _pad2d(b3.reshape(1, -1), 1, OUT_PAD).astype(jnp.float32)
    return (w1p, b1p, w2p, b2p, w3p, b3p)


def mlp_forward(x, params, *, bm_max=1024):
    """Matches MyModel.forward: x.view(-1, 784) -> fc1/relu -> fc2/relu -> fc3."""
    w1p, b1p, w2p, b2p, w3p, b3p = params

    x = x.reshape(-1, IN_DIM)
    batch = x.shape[0]
    out_dtype = x.dtype

    # Pad batch only to a sublane multiple (8); the grid handles any remainder
    # via pl.cdiv (partial trailing block), so no whole zero tiles are added.
    padded_batch = _round_up(batch, 8)
    if padded_batch != batch:
        x = jnp.pad(x, ((0, padded_batch - batch), (0, 0)))

    # Large batch tile to amortize the ~0.35us/step cost, but keep >=2 grid
    # steps whenever possible so both v7x TensorCores get "parallel" work.
    # Footprint at bm=1024: ~3.2 MiB/x-buffer f32 (double-buffered) + ~0.5 MiB
    # resident weights + ~0.5 MiB output -- far under every gen's VMEM limit.
    bm = min(bm_max, max(8, _round_up(pl.cdiv(padded_batch, 2), 8)))
    grid = (pl.cdiv(padded_batch, bm),)

    resident = lambda shape: pl.BlockSpec(shape, lambda i: (0, 0))

    out = pl.pallas_call(
        mlp_kernel,
        out_shape=jax.ShapeDtypeStruct((padded_batch, OUT_PAD), jnp.bfloat16),
        grid=grid,
        in_specs=[
            # x: f32, unpadded last dim (784 == full dim), tiled on batch.
            pl.BlockSpec((bm, IN_DIM), lambda i: (i, 0)),
            # Weights/biases: constant block index -> DMA'd once, stay resident.
            resident((IN_DIM, H1_PAD)),
            resident((1, H1_PAD)),
            resident((H1_PAD, H2_PAD)),
            resident((1, H2_PAD)),
            resident((H2_PAD, OUT_PAD)),
            resident((1, OUT_PAD)),
        ],
        out_specs=pl.BlockSpec((bm, OUT_PAD), lambda i: (i, 0)),
        compiler_params=pltpu.CompilerParams(
            dimension_semantics=("parallel",),
        ),
    )(x, w1p, b1p, w2p, b2p, w3p, b3p)

    # Single fused slice+cast back to the real (batch, 10) shape/dtype.
    return out[:batch, :OUT_DIM].astype(out_dtype)


def init_linear_params(key, fan_in, fan_out, dtype=jnp.float32):
    # Mimics torch.nn.Linear default init: U(-1/sqrt(fan_in), 1/sqrt(fan_in)),
    # stored as (in, out) so the kernel computes x @ W.
    kw, kb = jax.random.split(key)
    bound = 1.0 / jnp.sqrt(jnp.asarray(fan_in, dtype))
    w = jax.random.uniform(kw, (fan_in, fan_out), dtype, -bound, bound)
    b = jax.random.uniform(kb, (1, fan_out), dtype, -bound, bound)
    return w, b


if __name__ == "__main__":
    key = jax.random.PRNGKey(0)
    kx, k1, k2, k3 = jax.random.split(key, 4)

    x = jax.random.normal(kx, (BATCH, IN_DIM), jnp.float32)
    w1, b1 = init_linear_params(k1, IN_DIM, H1)
    w2, b2 = init_linear_params(k2, H1, H2)
    w3, b3 = init_linear_params(k3, H2, OUT_DIM)

    # One-time parameter preprocessing (padding + bf16 cast), then forward.
    params = prepare_params(w1, b1, w2, b2, w3, b3)
    out = mlp_forward(x, params)
    out = jax.block_until_ready(out)
    assert out.shape == (BATCH, OUT_DIM), out.shape

    # Plain-JAX f32 reference; bf16 MXU operands + bf16 output give ~1e-2
    # absolute error at these layer sizes, so compare with a loose tolerance.
    ref = jnp.maximum(x @ w1 + b1, 0.0)
    ref = jnp.maximum(ref @ w2 + b2, 0.0)
    ref = ref @ w3 + b3
    err = float(jnp.max(jnp.abs(out - ref)))
    assert jnp.allclose(out, ref, atol=5e-2, rtol=5e-2), f"max abs err = {err}"

    print("KERNEL_OK")
</pallas_src>

<mosaic_0001>
module attributes {stable_mosaic.version = 11 : i64} {
  func.func @mlp_kernel(%arg0: i32, %arg1: memref<8x784xf32, #tpu.memory_space<vmem>>, %arg2: memref<784x128xbf16, #tpu.memory_space<vmem>>, %arg3: memref<1x128xf32, #tpu.memory_space<vmem>>, %arg4: memref<128x128xbf16, #tpu.memory_space<vmem>>, %arg5: memref<1x128xf32, #tpu.memory_space<vmem>>, %arg6: memref<128x128xbf16, #tpu.memory_space<vmem>>, %arg7: memref<1x128xf32, #tpu.memory_space<vmem>>, %arg8: memref<8x128xbf16, #tpu.memory_space<vmem>>) attributes {dimension_semantics = [#tpu.dimension_semantics<parallel>], iteration_bounds = array<i64: 2>, scalar_prefetch = 0 : i64, scratch_operands = 0 : i64, tpu.core_type = #tpu.core_type<tc>, window_params = [{transform_indices = @transform_0, window_bounds = array<i64: 8, 784>}, {pipeline_mode = #tpu.pipeline_mode<synchronous>, transform_indices = @transform_1, window_bounds = array<i64: 784, 128>}, {pipeline_mode = #tpu.pipeline_mode<synchronous>, transform_indices = @transform_2, window_bounds = array<i64: 1, 128>}, {pipeline_mode = #tpu.pipeline_mode<synchronous>, transform_indices = @transform_3, window_bounds = array<i64: 128, 128>}, {pipeline_mode = #tpu.pipeline_mode<synchronous>, transform_indices = @transform_4, window_bounds = array<i64: 1, 128>}, {pipeline_mode = #tpu.pipeline_mode<synchronous>, transform_indices = @transform_5, window_bounds = array<i64: 128, 128>}, {pipeline_mode = #tpu.pipeline_mode<synchronous>, transform_indices = @transform_6, window_bounds = array<i64: 1, 128>}, {transform_indices = @transform_7, window_bounds = array<i64: 8, 128>}]} {
    %c0 = arith.constant 0 : index
    %c0_0 = arith.constant 0 : index
    %0 = vector.load %arg1[%c0, %c0_0] : memref<8x784xf32, #tpu.memory_space<vmem>>, vector<8x784xf32>
    %1 = arith.truncf %0 : vector<8x784xf32> to vector<8x784xbf16>
    %c0_1 = arith.constant 0 : index
    %c0_2 = arith.constant 0 : index
    %2 = vector.load %arg2[%c0_1, %c0_2] : memref<784x128xbf16, #tpu.memory_space<vmem>>, vector<784x128xbf16>
    %cst = arith.constant dense<0.000000e+00> : vector<8x128xf32>
    %3 = tpu.matmul %1, %2, %cst {dimension_numbers = #tpu.dot_dimension_numbers<[1], [0], [0], [1], [0, 0, 1, 1], [], []>} : vector<8x784xbf16>, vector<784x128xbf16>, vector<8x128xf32> -> vector<8x128xf32>
    %c0_3 = arith.constant 0 : index
    %c0_4 = arith.constant 0 : index
    %4 = vector.load %arg3[%c0_3, %c0_4] : memref<1x128xf32, #tpu.memory_space<vmem>>, vector<1x128xf32>
    %5 = vector.broadcast %4 : vector<1x128xf32> to vector<8x128xf32>
    %6 = arith.addf %3, %5 : vector<8x128xf32>
    %cst_5 = arith.constant 0.000000e+00 : f32
    %7 = vector.broadcast %cst_5 : f32 to vector<8x128xf32>
    %8 = arith.maximumf %6, %7 : vector<8x128xf32>
    %9 = arith.truncf %8 : vector<8x128xf32> to vector<8x128xbf16>
    %c0_6 = arith.constant 0 : index
    %c0_7 = arith.constant 0 : index
    %10 = vector.load %arg4[%c0_6, %c0_7] : memref<128x128xbf16, #tpu.memory_space<vmem>>, vector<128x128xbf16>
    %cst_8 = arith.constant dense<0.000000e+00> : vector<8x128xf32>
    %11 = tpu.matmul %9, %10, %cst_8 {dimension_numbers = #tpu.dot_dimension_numbers<[1], [0], [0], [1], [0, 0, 1, 1], [], []>} : vector<8x128xbf16>, vector<128x128xbf16>, vector<8x128xf32> -> vector<8x128xf32>
    %c0_9 = arith.constant 0 : index
    %c0_10 = arith.constant 0 : index
    %12 = vector.load %arg5[%c0_9, %c0_10] : memref<1x128xf32, #tpu.memory_space<vmem>>, vector<1x128xf32>
    %13 = vector.broadcast %12 : vector<1x128xf32> to vector<8x128xf32>
    %14 = arith.addf %11, %13 : vector<8x128xf32>
    %cst_11 = arith.constant 0.000000e+00 : f32
    %15 = vector.broadcast %cst_11 : f32 to vector<8x128xf32>
    %16 = arith.maximumf %14, %15 : vector<8x128xf32>
    %17 = arith.truncf %16 : vector<8x128xf32> to vector<8x128xbf16>
    %c0_12 = arith.constant 0 : index
    %c0_13 = arith.constant 0 : index
    %18 = vector.load %arg6[%c0_12, %c0_13] : memref<128x128xbf16, #tpu.memory_space<vmem>>, vector<128x128xbf16>
    %cst_14 = arith.constant dense<0.000000e+00> : vector<8x128xf32>
    %19 = tpu.matmul %17, %18, %cst_14 {dimension_numbers = #tpu.dot_dimension_numbers<[1], [0], [0], [1], [0, 0, 1, 1], [], []>} : vector<8x128xbf16>, vector<128x128xbf16>, vector<8x128xf32> -> vector<8x128xf32>
    %c0_15 = arith.constant 0 : index
    %c0_16 = arith.constant 0 : index
    %20 = vector.load %arg7[%c0_15, %c0_16] : memref<1x128xf32, #tpu.memory_space<vmem>>, vector<1x128xf32>
    %21 = vector.broadcast %20 : vector<1x128xf32> to vector<8x128xf32>
    %22 = arith.addf %19, %21 : vector<8x128xf32>
    %23 = arith.truncf %22 : vector<8x128xf32> to vector<8x128xbf16>
    %c0_17 = arith.constant 0 : index
    %c0_18 = arith.constant 0 : index
    %24 = vector.load %arg8[%c0_17, %c0_18] : memref<8x128xbf16, #tpu.memory_space<vmem>>, vector<8x128xbf16>
    tpu.vector_store %arg8[%c0_17, %c0_18], %23 {strides = array<i32>} : memref<8x128xbf16, #tpu.memory_space<vmem>>, vector<8x128xbf16>,
    return
  }
  func.func @transform_0(%arg0: i32) -> (i32, i32) {
    %c0_i32 = arith.constant 0 : i32
    %c0_i32_0 = arith.constant 0 : i32
    return %arg0, %c0_i32 : i32, i32
  }
  func.func @transform_1(%arg0: i32) -> (i32, i32) {
    %c0_i32 = arith.constant 0 : i32
    %c0_i32_0 = arith.constant 0 : i32
    %c0_i32_1 = arith.constant 0 : i32
    return %c0_i32, %c0_i32_0 : i32, i32
  }
  func.func @transform_2(%arg0: i32) -> (i32, i32) {
    %c0_i32 = arith.constant 0 : i32
    %c0_i32_0 = arith.constant 0 : i32
    %c0_i32_1 = arith.constant 0 : i32
    return %c0_i32, %c0_i32_0 : i32, i32
  }
  func.func @transform_3(%arg0: i32) -> (i32, i32) {
    %c0_i32 = arith.constant 0 : i32
    %c0_i32_0 = arith.constant 0 : i32
    %c0_i32_1 = arith.constant 0 : i32
    return %c0_i32, %c0_i32_0 : i32, i32
  }
  func.func @transform_4(%arg0: i32) -> (i32, i32) {
    %c0_i32 = arith.constant 0 : i32
    %c0_i32_0 = arith.constant 0 : i32
    %c0_i32_1 = arith.constant 0 : i32
    return %c0_i32, %c0_i32_0 : i32, i32
  }
  func.func @transform_5(%arg0: i32) -> (i32, i32) {
    %c0_i32 = arith.constant 0 : i32
    %c0_i32_0 = arith.constant 0 : i32
    %c0_i32_1 = arith.constant 0 : i32
    return %c0_i32, %c0_i32_0 : i32, i32
  }
  func.func @transform_6(%arg0: i32) -> (i32, i32) {
    %c0_i32 = arith.constant 0 : i32
    %c0_i32_0 = arith.constant 0 : i32
    %c0_i32_1 = arith.constant 0 : i32
    return %c0_i32, %c0_i32_0 : i32, i32
  }
  func.func @transform_7(%arg0: i32) -> (i32, i32) {
    %c0_i32 = arith.constant 0 : i32
    %c0_i32_0 = arith.constant 0 : i32
    return %arg0, %c0_i32 : i32, i32
  }
}

</mosaic_0001>

<bundles_post_ra>
// kernel: tpu_custom_call.1
= control target key start
LH: loop header
LB: loop body
LE: loop exit
PB: predicated region body
PF: predicated region fallthrough
CT: control target
= control target key end

     0   :  { %s2084_s0 = inlined_call_operand.hbm [shape: f32[16,784], index: 0, kind: input, shape index: {}]   ;;  %s2085_s1 = inlined_call_operand.hbm [shape: bf16[784,128], index: 1, kind: input, shape index: {}]   ;;  %s2086_s2 = inlined_call_operand.vmem [shape: f32[1,128], index: 2, kind: input, shape index: {}]   ;;  %s2087_s3 = inlined_call_operand.hbm [shape: bf16[128,128], index: 3, kind: input, shape index: {}]   ;;  %s2088_s4 = inlined_call_operand.vmem [shape: f32[1,128], index: 4, kind: input, shape index: {}]   ;;  %s2089_s5 = inlined_call_operand.hbm [shape: bf16[128,128], index: 5, kind: input, shape index: {}]   ;;  %s2090_s6 = inlined_call_operand.vmem [shape: f32[1,128], index: 6, kind: input, shape index: {}]   ;;  %s2091_s7 = inlined_call_operand.hbm [shape: bf16[16,128], index: 7, kind: output, shape index: {}]  }
   0x1   :  { %2096 = sst [smem:[#allocation15_spill]] %s2085_s1 }
   0x2   :  { %2097 = sst [smem:[#allocation16_spill]] %s2087_s3 }
   0x3   :  { %12 = vsyncpa [#allocation3], 0 }
   0x4   :  { %14 = vsyncpa [#allocation3 + $0x1], 0 }
   0x5   :  { %15 = vsyncpa [#allocation6], 0 }
   0x6   :  { %16 = vsyncpa [#allocation9], 0 }
   0x7   :  { %17 = vsyncpa [#allocation4], 0 }
   0x8   :  { %19 = vsyncpa [#allocation4 + $0x1], 0  ;;  %s1853_s24 = smov 0   ;;  %s1855_s25 = smov 0  }
   0x9   :  { %s1857_s26 = smov 0   ;;  %s1859_s27 = smov 0  }
   0xa LB: > { %s1874_s28 = sadd.s32 4294967295, %s1802_s27   ;;  %s1258_s29 = sadd.s32 4294967294, %s1802_s27   ;;  %s1802_s27 = sphi %s1859_s27, %s2119_s27   ;;  %s1798_s26 = sphi %s1857_s26, %s2118_s26   ;;  %s1794_s25 = sphi %s1855_s25, %s2117_s25   ;;  %s1790_s24 = sphi %s1853_s24, %s2116_s24  }
   0xb   : > { %p45_p0 = scmp.ne.s32.totalorder %s1794_s25, %s1790_s24  ;;  %p2092_p1 = scmp.eq.s32.totalorder %s1874_s28, 0 }
   0xc   : > { %p201_p3 = scmp.eq.s32.totalorder %s1258_s29, 1  ;;  %p1259_p5 = scmp.ge.s32.totalorder %s1802_s27, 1 }
   0xd   : > { %p1883_p4 = por %p2092_p1, %p45_p0  ;;  %p208_p7 = scmp.lt.s32.totalorder %s1802_s27, 3 }
   0xe   : > { %p1888_p6 = por %p201_p3, %p45_p0  ;;  %s1804_s10 = smov [#allocation5]  }
   0xf   : > { %s2098_s30 = scalar_select %p1883_p4, 1, 0 }
  0x10   : > { %s2099_s8 = scalar_select %p1888_p6, 1, 0 }
  0x11   : > { %p1893_p8 = pnand %p1259_p5, %p208_p7  ;;  %s220_s11 = sshll.u32 %s1804_s10, 4  ;;  %s221_s11 = int_to_ptr.vmem [resolvable:$true] %s220_s11 }
  0x12   : > { %s1805_s13 = smov [#allocation7]   ;;  %s1806_s15 = smov [#allocation8]  }
  0x13   : > { %s2100_s9 = scalar_select %p1893_p8, 1, 0 }
  0x14   : > { %p1494_p9 = pneg %p1893_p8  ;;  %s236_s14 = sshll.u32 %s1805_s13, 4  ;;  %s237_s14 = int_to_ptr.vmem [resolvable:$true] %s236_s14 }
  0x15   : > { %s252_s16 = sshll.u32 %s1806_s15, 4  ;;  %s1635_s17 = scalar_lea.vmem %s221_s11, 6272  ;;  %s253_s16 = int_to_ptr.vmem [resolvable:$true] %s252_s16 }
  0x16   : > { %p1902_p11 = pnand %p1494_p9, %p2092_p1  ;;  %p1636_p13 = scmp.ne.s32.totalorder %s221_s11, %s1635_s17 }
  0x17   : > { %p1643_p5 = scmp.lt.s32.totalorder %s221_s11, %s221_s11  ;;  %p1644_p7 = scmp.lt.s32.totalorder %s1635_s17, %s1635_s17 }
  0x18   : > { %p1626_p12 = pneg %p1902_p11 }
  0x19   : > { %p1645_p9 = por %p1644_p7, %p1643_p5 }
  0x1a   : > { %p1638_p0 = pnand %p1636_p13, %p1626_p12 }
  0x1c   : > { %p1639_p3 = pneg %p1638_p0 }
  0x1e   : > { %p1646_p10 = pnand %p1645_p9, %p1639_p3 }
  0x20   : > { %1649 = shalt.err (!%p1646_p10)
}
  0x21   : > { %s1807_s18 = smov 64   ;;  %s1808_s19 = smov 4  }
  0x22   : > { %s2102_s1 = sld [smem:[#allocation15_spill]]  ;;  %s1661_s22 = scalar_lea.vmem %s237_s14, 1024 }
  0x23   : > { %p1662_p1 = scmp.ne.s32.totalorder %s237_s14, %s1661_s22  ;;  %p1669_p2 = scmp.lt.s32.totalorder %s237_s14, %s237_s14 }
  0x24   : > { %p1670_p6 = scmp.lt.s32.totalorder %s1661_s22, %s1661_s22 }
  0x25   : > { %p1664_p13 = pnand %p1662_p1, %p1626_p12 }
  0x26   : > { %p1671_p5 = por %p1670_p6, %p1669_p2 }
  0x27   : > { %p1665_p0 = pneg %p1664_p13 }
  0x28   : > { %1497 = dma.hbm_to_vmem [thread:$0]  (!%p1902_p11), %s2102_s1, 6272, %s221_s11, [#allocation6], %s1807_s18, %s1807_s18, %s1808_s19  }
  0x29   : > { %p1672_p3 = pnand %p1671_p5, %p1665_p0 }
  0x2b   : > { %1675 = shalt.err (!%p1672_p3)
}
  0x2c   : > { %s2103_s3 = sld [smem:[#allocation16_spill]]  ;;  %s1687_s10 = scalar_lea.vmem %s253_s16, 1024 }
  0x2d   : > { %p1688_p10 = scmp.ne.s32.totalorder %s253_s16, %s1687_s10  ;;  %p1695_p9 = scmp.lt.s32.totalorder %s253_s16, %s253_s16 }
  0x2e   : > { %p1696_p13 = scmp.lt.s32.totalorder %s1687_s10, %s1687_s10 }
  0x2f   : > { %p1690_p7 = pnand %p1688_p10, %p1626_p12 }
  0x30   : > { %p1697_p4 = por %p1696_p13, %p1695_p9 }
  0x31   : > { %p1691_p1 = pneg %p1690_p7 }
  0x32   : > { %1500 = dma.hbm_to_vmem [thread:$0]  (!%p1902_p11), %s2103_s3, 1024, %s237_s14, [#allocation6], %s1807_s18, %s1807_s18, %s1808_s19  }
  0x33   : > { %p1698_p2 = pnand %p1697_p4, %p1691_p1 }
  0x35   : > { %1701 = shalt.err (!%p1698_p2)
}
  0x36   : > { %1503 = dma.hbm_to_vmem [thread:$0]  (!%p1902_p11), %s2089_s5, 1024, %s253_s16, [#allocation9], %s1807_s18, %s1807_s18, %s1808_s19  }
  0x37   : > { %s1933_s14 = sadd.s32 1, %s1802_s27   ;;  %s32_s12 = sadd.s32 1, %s1798_s26 }
  0x38   : > { %s29_s15 = ssub.s32 %s1802_s27, %s1933_s14  ;;  %p39_p6 = scmp.ne.s32.totalorder %s1798_s26, %s1794_s25 }
  0x39   : > { %p30_p4 = scmp.eq.s32.totalorder %s29_s15, 0  ;;  %p40_p12 = scmp.eq.s32.totalorder %s1802_s27, 0 }
  0x3a   : > { %p1515_p0 = scmp.lt.s32.totalorder %s1802_s27, 2  ;;  %p2104_p3 = scmp.eq.s32.totalorder %s1874_s28, 1 }
  0x3b   : > { %s1943_s17 = scalar_select %p30_p4, %s1798_s26, %s32_s12  }
  0x3c   : > { %p41_p5 = por %p40_p12, %p39_p6  ;;  %p1947_p10 = por %p2104_p3, %p39_p6 }
  0x3d   : > { %s269_s21 = sand.u32 1, %s1798_s26   ;;  %s1476_s22 = smul.u32 896, %s1802_s27 }
  0x3e   : > { %s2105_s20 = scalar_select %p1947_p10, 1, 0 }
  0x3f   : > { %s1475_s16 = smul.u32 56, %s269_s21  ;;  %p1953_p11 = pnand %p1515_p0, %p41_p5 }
  0x40   : > { %s1960_s29 = scalar_lea.hbm %s2084_s0, %s1476_s22  ;;  %s270_s13 = scalar_lea.sflag [#allocation3], %s269_s21 }
  0x41   : > { %s273_s10 = scalar_lea.vmem [#allocation2], %s1475_s16  ;;  %s1702_s15 = scalar_lea.hbm %s1960_s29, 896 }
  0x42   : > { %s281_s11 = sshll.u32 %s273_s10, 4  ;;  %p1703_p7 = scmp.ne.s32.totalorder %s1960_s29, %s1702_s15  ;;  %s282_s11 = int_to_ptr.vmem [resolvable:$true] %s281_s11 }
  0x43   : > { %p1704_p1 = pneg %p1953_p11  ;;  %s1707_s19 = scalar_lea.hbm %s2084_s0, 1792 }
  0x44   : > { %p1708_p2 = scmp.lt.s32.totalorder %s1960_s29, %s2084_s0  ;;  %p1709_p4 = scmp.lt.s32.totalorder %s1707_s19, %s1702_s15 }
  0x45   : > { %p1705_p9 = pnand %p1704_p1, %p1703_p7 }
  0x46   : > { %p1710_p6 = por %p1709_p4, %p1708_p2 }
  0x47   : > { %p1706_p13 = pneg %p1705_p9 }
  0x49   : > { %p1711_p12 = pnand %p1710_p6, %p1706_p13 }
  0x4b   : > { %1714 = shalt.err (!%p1711_p12)
}
  0x4c   : > { %s1715_s16 = scalar_lea.vmem %s282_s11, 896  ;;  %s1809_s21 = smov [#allocation2]  }
  0x4d   : > { %p1716_p0 = scmp.ne.s32.totalorder %s282_s11, %s1715_s16  ;;  %s1720_s10 = sshll.u32 %s1809_s21, 4  ;;  %s1721_s10 = int_to_ptr.vmem [resolvable:$false] %s1720_s10 }
  0x4e   : > { %s1722_s3 = scalar_lea.vmem %s1721_s10, 1792  ;;  %p1723_p7 = scmp.lt.s32.totalorder %s282_s11, %s1721_s10 }
  0x4f   : > { %p1718_p5 = pnand %p1716_p0, %p1704_p1  ;;  %p1724_p9 = scmp.lt.s32.totalorder %s1722_s3, %s1715_s16 }
  0x51   : > { %p1719_p3 = pneg %p1718_p5  ;;  %p1725_p10 = por %p1724_p9, %p1723_p7 }
  0x53   : > { %p1726_p8 = pnand %p1725_p10, %p1719_p3 }
  0x55   : > { %1729 = shalt.err (!%p1726_p8)
}
  0x56   : > { %1507 = dma.hbm_to_vmem [thread:$0]  (!%p1953_p11), %s1960_s29, 896, %s282_s11, %s270_s13  }
  0x57   : > { %p2107_p13 = scmp.ne.s32.totalorder %s2100_s9, 0 }
  0x58   : > { %s1979_s1 = sand.u32 (!%p2107_p13), 1, %s1794_s25   ;;  %p2108_p1 = scmp.ne.s32.totalorder (!%p2107_p13), %s2098_s30, 0 }
  0x59   : > { %290 = sbr.rel (%p2107_p13) target bundleno = 781 (0x30d), region = 48  ;;  %s293_s12 = scalar_lea.sflag (!%p2107_p13), [#allocation3], %s1979_s1 }
  0x5a   : > { %s1477_s15 = smul.u32 (!%p2107_p13), 56, %s1979_s1 }
  0x5c   : > { %s1983_s19 = scalar_lea.vmem (!%p2107_p13), [#allocation2], %s1477_s15 }
  0x5e   : > { %1773 = dma.done.wait (%p2108_p1), %s293_s12, 896  }
  0x5f   : > { %1775 = vsyncadd (%p2108_p1), %s293_s12, 4294966400  ;;  %p2109_p8 = scmp.eq.s32.totalorder %s1874_s28, 0 }
  0x61   : > { %1777 = dma.done.wait (%p2109_p8), [#allocation6], 7296   ;;  %p2110_p10 = pmov %p2109_p8 }
  0x62   : > { %p2111_p11 = pmov %p2109_p8 }
  0x63   : > { %1779 = vsyncadd (%p2110_p10), [#allocation6], 4294960000 }
  0x64   : > { %1781 = dma.done.wait (%p2111_p11), [#allocation9], 1024   ;;  %p2112_p2 = pmov %p2109_p8 }
  0x65   : > { %v1559_v0 = vld [vmem:[#allocation5 + $0x78] sm:$0xff]   ;;  %v1563_v4 = vld [vmem:[#allocation5 + $0x70] sm:$0xff]   ;;  %v1567_v8 = vld [vmem:[#allocation5 + $0x68] sm:$0xff]   ;;  %v1810_v44 = vmov 0.0   ;;  %vm1811_vm0 = vmmov 0   ;;  %vm753_vm1 = vcmask 130048  }
  0x66   : > { %1783 = vsyncadd (%p2112_p2), [#allocation9], 4294966272  ;;  %v1560_v1 = vld [vmem:[#allocation5 + $0x38] sm:$0xff]   ;;  %1343 = vmatprep.subr.bf16.mxu0 %v1559_v0  ;;  %v1564_v5 = vld [vmem:[#allocation5 + $0x30] sm:$0xff]   ;;  %s1269_s29 = sshll.u32 %s1979_s1, 2  ;;  %s1340_s23 = sshll.u32 %s1874_s28, 6 }
  0x67   : > { %v1561_v2 = vld [vmem:[#allocation5 + $0xf8] sm:$0xff]   ;;  %1344 = vmatpush3.bf16.msra.mxu0 %v1560_v1  ;;  %v1565_v6 = vld [vmem:[#allocation5 + $0xf0] sm:$0xff]   ;;  %v1568_v9 = vld [vmem:[#allocation5 + $0x28] sm:$0xff]   ;;  %s338_s22 = scalar_lea.vmem [#allocation10], %s1269_s29  ;;  %s2041_s15 = scalar_lea.hbm %s2091_s7, %s1340_s23 }
  0x68   : > { %v1562_v3 = vld [vmem:[#allocation5 + $0xb8] sm:$0xff]   ;;  %1365 = vmatprep.subr.bf16.mxu1 %v1561_v2  ;;  %1345 = vmatprep.subr.bf16.mxu0 %v1563_v4  ;;  %v1566_v7 = vld [vmem:[#allocation5 + $0xb0] sm:$0xff]   ;;  %v1569_v10 = vld [vmem:[#allocation5 + $0xe8] sm:$0xff]   ;;  %s1159_s16 = sshll.u32 %s338_s22, 4  ;;  %s1146_s12 = scalar_lea.sflag [#allocation4], %s1979_s1  ;;  %s2043_s16 = int_to_ptr.vmem [resolvable:$true] %s1159_s16 }
  0x69   : > { %1366 = vmatpush3.bf16.msra.mxu1 %v1562_v3  ;;  %v1570_v11 = vld [vmem:[#allocation5 + $0xa8] sm:$0xff]   ;;  %v1571_v12 = vld [vmem:[#allocation5 + $0x60] sm:$0xff]   ;;  %v1575_v16 = vld [vmem:[#allocation5 + $0x58] sm:$0xff]   ;;  %s1730_s28 = scalar_lea.vmem %s2043_s16, 64  ;;  %p2113_p6 = scmp.ne.s32.totalorder %s2105_s20, 0 }
  0x6a   : > { %1367 = vmatprep.subr.bf16.mxu1 %v1565_v6  ;;  %v1572_v13 = vld [vmem:[#allocation5 + $0x20] sm:$0xff]   ;;  %v1576_v17 = vld [vmem:[#allocation5 + $0x18] sm:$0xff]   ;;  %v1579_v20 = vld [vmem:[#allocation5 + $0x50] sm:$0xff]   ;;  %p1731_p4 = scmp.ne.s32.totalorder %s2043_s16, %s1730_s28 }
  0x6b   : > { %1346 = vmatpush3.bf16.msra.mxu0 %v1564_v5  ;;  %v1573_v14 = vld [vmem:[#allocation5 + $0xe0] sm:$0xff]   ;;  %v1577_v18 = vld [vmem:[#allocation5 + $0xd8] sm:$0xff]   ;;  %v1580_v21 = vld [vmem:[#allocation5 + $0x10] sm:$0xff]  }
  0x6c   : > { %1347 = vmatprep.subr.bf16.mxu0 %v1567_v8  ;;  %v1574_v15 = vld [vmem:[#allocation5 + $0xa0] sm:$0xff]   ;;  %v1578_v19 = vld [vmem:[#allocation5 + $0x98] sm:$0xff]   ;;  %v1581_v22 = vld [vmem:[#allocation5 + $0xd0] sm:$0xff]   ;;  %p1732_p12 = pnand %p1731_p4, %p2113_p6 }
  0x6d   : > { %1368 = vmatpush3.bf16.msra.mxu1 %v1566_v7  ;;  %v1582_v23 = vld [vmem:[#allocation5 + $0x90] sm:$0xff]   ;;  %v1583_v24 = vld [vmem:[#allocation5 + $0x48] sm:$0xff]   ;;  %v1587_v28 = vld [vmem:[#allocation5 + $0x40] sm:$0xff]  }
  0x6e   : > { %1369 = vmatprep.subr.bf16.mxu1 %v1569_v10  ;;  %v1584_v25 = vld [vmem:[#allocation5 + $0x8] sm:$0xff]   ;;  %v1588_v29 = vld [vmem:[#allocation5] sm:$0xff]   ;;  %v341_v31 = vld [vmem:[%s1983_s19 + $0x8] sm:$0xff]  ;;  %p1733_p0 = pneg %p1732_p12 }
  0x6f   : > { %1348 = vmatpush3.bf16.msra.mxu0 %v1568_v9  ;;  %v1585_v26 = vld [vmem:[#allocation5 + $0xc8] sm:$0xff]   ;;  %v1589_v30 = vld [vmem:[#allocation5 + $0xc0] sm:$0xff]   ;;  %v348_v32 = vpack.c.bf16 %v341_v31, %v341_v31  ;;  %v1591_v36 = vld [vmem:[#allocation5 + $0x178] sm:$0xff]  }
  0x70   : > { %1349 = vmatprep.subr.bf16.mxu0 %v1571_v12  ;;  %v1586_v27 = vld [vmem:[#allocation5 + $0x88] sm:$0xff]   ;;  %v1590_v33 = vld [vmem:[#allocation5 + $0x80] sm:$0xff]   ;;  %v1592_v39 = vld [vmem:[#allocation5 + $0x138] sm:$0xff]  }
  0x71   : > { %1370 = vmatpush3.bf16.msra.mxu1 %v1570_v11  ;;  %v340_v34 = vld [vmem:[%s1983_s19] sm:$0xff]  ;;  %v343_v37 = vld [vmem:[%s1983_s19 + $0x18] sm:$0xff]  ;;  %789 = vmatprep.mubr.bf16.mxu0 %v348_v32  ;;  %v342_v40 = vld [vmem:[%s1983_s19 + $0x10] sm:$0xff] }
  0x72   : > { %1371 = vmatprep.subr.bf16.mxu1 %v1573_v14  ;;  %v347_v35 = vpack.c.bf16 %v340_v34, %v340_v34  ;;  %v350_v38 = vpack.c.bf16 %v343_v37, %v343_v37  ;;  %v349_v41 = vpack.c.bf16 %v342_v40, %v342_v40  ;;  %v1593_v42 = vld [vmem:[#allocation5 + $0x170] sm:$0xff]   ;;  %v1595_v45 = vld [vmem:[#allocation5 + $0x168] sm:$0xff]   ;;  %v1597_v47 = vld [vmem:[#allocation5 + $0x160] sm:$0xff]  }
  0x73   : > { %1350 = vmatpush3.bf16.msra.mxu0 %v1572_v13  ;;  %v1594_v43 = vld [vmem:[#allocation5 + $0x130] sm:$0xff]   ;;  %v1596_v46 = vld [vmem:[#allocation5 + $0x128] sm:$0xff]   ;;  %v1598_v48 = vld [vmem:[#allocation5 + $0x120] sm:$0xff]  }
  0x74   : > { %1351 = vmatprep.subr.bf16.mxu0 %v1575_v16  ;;  %829 = vmatprep.mubr.bf16.mxu1 %v350_v38  ;;  %v1599_v49 = vld [vmem:[#allocation5 + $0x158] sm:$0xff]   ;;  %v1601_v51 = vld [vmem:[#allocation5 + $0x150] sm:$0xff]   ;;  %v1607_v53 = vld [vmem:[#allocation5 + $0x180] sm:$0xff]  }
  0x75   : > { %1372 = vmatpush3.bf16.msra.mxu1 %v1574_v15  ;;  %v1600_v50 = vld [vmem:[#allocation5 + $0x118] sm:$0xff]   ;;  %v1602_v52 = vld [vmem:[#allocation5 + $0x110] sm:$0xff]   ;;  %v1603_v55 = vld [vmem:[#allocation5 + $0x148] sm:$0xff]  }
  0x76   : > { %1373 = vmatprep.subr.bf16.mxu1 %v1577_v18  ;;  %v345_v54 = vld [vmem:[%s1983_s19 + $0x28] sm:$0xff]  ;;  %v346_v57 = vld [vmem:[%s1983_s19 + $0x30] sm:$0xff]  ;;  %v1604_v59 = vld [vmem:[#allocation5 + $0x108] sm:$0xff]  }
  0x77   : > { %1352 = vmatpush3.bf16.msra.mxu0 %v1576_v17  ;;  %v352_v56 = vpack.c.bf16 %v345_v54, %v345_v54  ;;  %v353_v58 = vpack.c.bf16 %v346_v57, %v346_v57  ;;  %v1605_v60 = vld [vmem:[#allocation5 + $0x140] sm:$0xff]   ;;  %v344_v62 = vld [vmem:[%s1983_s19 + $0x20] sm:$0xff]  ;;  %v1609_v1 = vld [vmem:[#allocation7 + $0x30] sm:$0xff]   ;;  %s1812_s19 = smov [#allocation10]  }
  0x78   : > { %1353 = vmatprep.subr.bf16.mxu0 %v1579_v20  ;;  %v1606_v61 = vld [vmem:[#allocation5 + $0x100] sm:$0xff]   ;;  %v351_v63 = vpack.c.bf16 %v344_v62, %v344_v62  ;;  %v1610_v2 = vld [vmem:[#allocation7 + $0x28] sm:$0xff]   ;;  %v1611_v3 = vld [vmem:[#allocation7 + $0x20] sm:$0xff]   ;;  %s1734_s3 = sshll.u32 %s1812_s19, 4  ;;  %s1735_s3 = int_to_ptr.vmem [resolvable:$false] %s1734_s3 }
  0x79   : > { %1374 = vmatpush3.bf16.msra.mxu1 %v1578_v19  ;;  %v1608_v0 = vld [vmem:[#allocation7 + $0x38] sm:$0xff]   ;;  %v1613_v5 = vld [vmem:[#allocation7 + $0x10] sm:$0xff]   ;;  %v1614_v6 = vld [vmem:[#allocation7 + $0x8] sm:$0xff]   ;;  %s1736_s30 = scalar_lea.vmem %s1735_s3, 128  ;;  %p1737_p5 = scmp.lt.s32.totalorder %s2043_s16, %s1735_s3 }
  0x7a   : > { %1375 = vmatprep.subr.bf16.mxu1 %v1581_v22  ;;  %v1612_v4 = vld [vmem:[#allocation7 + $0x18] sm:$0xff]   ;;  %v1615_v7 = vld [vmem:[#allocation7] sm:$0xff]   ;;  %v1617_v9 = vld [vmem:[#allocation8 + $0x30] sm:$0xff]   ;;  %p1738_p3 = scmp.lt.s32.totalorder %s1736_s30, %s1730_s28 }
  0x7b   : > { %1354 = vmatpush3.bf16.msra.mxu0 %v1580_v21  ;;  %v1616_v8 = vld [vmem:[#allocation8 + $0x38] sm:$0xff]   ;;  %v1618_v10 = vld [vmem:[#allocation8 + $0x28] sm:$0xff]   ;;  %v1619_v11 = vld [vmem:[#allocation8 + $0x20] sm:$0xff]  }
  0x7c   : > { %1355 = vmatprep.subr.bf16.mxu0 %v1583_v24  ;;  %v1620_v12 = vld [vmem:[#allocation8 + $0x18] sm:$0xff]   ;;  %v1621_v13 = vld [vmem:[#allocation8 + $0x10] sm:$0xff]   ;;  %v1622_v40 = vld [vmem:[#allocation8 + $0x8] sm:$0xff]   ;;  %p1739_p7 = por %p1738_p3, %p1737_p5 }
  0x7d   : > { %1376 = vmatpush3.bf16.msra.mxu1 %v1582_v23 }
  0x7e   : > { %1377 = vmatprep.subr.bf16.mxu1 %v1585_v26  ;;  %p1740_p9 = pnand %p1739_p7, %p1733_p0 }
  0x7f   : > { %1356 = vmatpush3.bf16.msra.mxu0 %v1584_v25 }
  0x80   : > { %1357 = vmatprep.subr.bf16.mxu0 %v1587_v28 }
  0x81   : > { %1378 = vmatpush3.bf16.msra.mxu1 %v1586_v27  ;;  %v1270_v27 = vld [vmem:[%s2086_s2] ss:$0 sm:$0xff] }
  0x82   : > { %1379 = vmatprep.subr.bf16.mxu1 %v1589_v30 }
  0x83   : > { %1358 = vmatpush3.bf16.msra.mxu0 %v1588_v29 }
  0x84   : > { %1387 = vmatprep.subr.bf16.mxu0 %v1591_v36 }
  0x85   : > { %1380 = vmatpush3.bf16.msra.mxu1 %v1590_v33 }
  0x86   : > { %790 = vmatmul.mubr.bf16.vlgmr.msra.gmra.mxu0 %v347_v35  ;;  %1429 = vmatprep.subr.bf16.mxu1 %v1810_v44 }
  0x87   : > { %1388 = vmatpush3.bf16.msra.mxu0 %v1592_v39  ;;  %869 = vmatprep.mubr.bf16.mxu0 %v352_v56 }
  0x88   : > { %830 = vmatmul.mubr.bf16.vlgmr.msra.gmra.mxu1 %v349_v41  ;;  %1389 = vmatprep.subr.bf16.mxu0 %v1593_v42  ;;  %v1623_v41 = vld [vmem:[#allocation8] sm:$0xff]   ;;  %v1321_v42 = vld [vmem:[%s2088_s4] ss:$0 sm:$0xff] }
  0x89   : > { %1431 = vmatprep.mubr.msk.bf16.mxu1 %vm1811_vm0, %v1810_v44  ;;  %1430 = vmatpush3.bf16.msra.mxu1 %v1607_v53 }
  0x8a   : > { %1435 = vmatprep.subr.bf16.mxu1 %v1810_v44 }
  0x8b   : > { %1390 = vmatpush3.bf16.msra.mxu0 %v1594_v43 }
  0x8c   : > { %1391 = vmatprep.subr.bf16.mxu0 %v1595_v45 }
  0x8f   : > { %1392 = vmatpush3.bf16.msra.mxu0 %v1596_v46 }
  0x90   : > { %1393 = vmatprep.subr.bf16.mxu0 %v1597_v47  ;;  %1432 = vmatmul.mubr.msk.bf16.vlgmr.msra.gmra.mxu1 %vm753_vm1, %v353_v58 }
  0x91   : > { %1451 = vmatprep.mubr.msk.bf16.mxu1 %vm1811_vm0, %v1810_v44  ;;  %1436 = vmatpush3.bf16.msra.mxu1 %v1608_v0 }
  0x92   : > { %1437 = vmatprep.subr.bf16.mxu1 %v1810_v44 }
  0x93   : > { %1394 = vmatpush3.bf16.msra.mxu0 %v1598_v48 }
  0x94   : > { %1395 = vmatprep.subr.bf16.mxu0 %v1599_v49 }
  0x95   : > { %1438 = vmatpush3.bf16.msra.mxu1 %v1609_v1 }
  0x96   : > { %1439 = vmatprep.subr.bf16.mxu1 %v1810_v44 }
  0x97   : > { %1396 = vmatpush3.bf16.msra.mxu0 %v1600_v50 }
  0x98   : > { %1397 = vmatprep.subr.bf16.mxu0 %v1601_v51 }
  0x99   : > { %1440 = vmatpush3.bf16.msra.mxu1 %v1610_v2 }
  0x9a   : > { %1441 = vmatprep.subr.bf16.mxu1 %v1810_v44 }
  0x9b   : > { %1398 = vmatpush3.bf16.msra.mxu0 %v1602_v52 }
  0x9c   : > { %1399 = vmatprep.subr.bf16.mxu0 %v1603_v55 }
  0x9d   : > { %1442 = vmatpush3.bf16.msra.mxu1 %v1611_v3 }
  0x9e   : > { %1443 = vmatprep.subr.bf16.mxu1 %v1810_v44 }
  0x9f   : > { %1400 = vmatpush3.bf16.msra.mxu0 %v1604_v59 }
  0xa0   : > { %1401 = vmatprep.subr.bf16.mxu0 %v1605_v60 }
  0xa1   : > { %1444 = vmatpush3.bf16.msra.mxu1 %v1612_v4 }
  0xa2   : > { %1445 = vmatprep.subr.bf16.mxu1 %v1810_v44 }
  0xa3   : > { %1402 = vmatpush3.bf16.msra.mxu0 %v1606_v61 }
  0xa4   : > { %1455 = vmatprep.subr.bf16.mxu0 %v1810_v44 }
  0xa5   : > { %1446 = vmatpush3.bf16.msra.mxu1 %v1613_v5 }
  0xa6   : > { %870 = vmatmul.mubr.bf16.vlgmr.msra.gmra.mxu0 %v351_v63  ;;  %1447 = vmatprep.subr.bf16.mxu1 %v1810_v44 }
  0xa7   : > { %1471 = vmatprep.mubr.msk.bf16.mxu0 %vm1811_vm0, %v1810_v44  ;;  %1456 = vmatpush3.bf16.msra.mxu0 %v1616_v8 }
  0xa8   : > { %1457 = vmatprep.subr.bf16.mxu0 %v1810_v44 }
  0xa9   : > { %1448 = vmatpush3.bf16.msra.mxu1 %v1614_v6 }
  0xaa   : > { %1449 = vmatprep.subr.bf16.mxu1 %v1810_v44 }
  0xab   : > { %1458 = vmatpush3.bf16.msra.mxu0 %v1617_v9 }
  0xac   : > { %1459 = vmatprep.subr.bf16.mxu0 %v1810_v44 }
  0xad   : > { %1450 = vmatpush3.bf16.msra.mxu1 %v1615_v7 }
  0xaf   : > { %1460 = vmatpush3.bf16.msra.mxu0 %v1618_v10 }
  0xb0   : > { %1461 = vmatprep.subr.bf16.mxu0 %v1810_v44 }
  0xb3   : > { %1462 = vmatpush3.bf16.msra.mxu0 %v1619_v11 }
  0xb4   : > { %1463 = vmatprep.subr.bf16.mxu0 %v1810_v44 }
  0xb7   : > { %1464 = vmatpush3.bf16.msra.mxu0 %v1620_v12 }
  0xb8   : > { %1465 = vmatprep.subr.bf16.mxu0 %v1810_v44 }
  0xbb   : > { %1466 = vmatpush3.bf16.msra.mxu0 %v1621_v13 }
  0xbc   : > { %1467 = vmatprep.subr.bf16.mxu0 %v1810_v44 }
  0xbf   : > { %1468 = vmatpush3.bf16.msra.mxu0 %v1622_v40 }
  0xc0   : > { %1469 = vmatprep.subr.bf16.mxu0 %v1810_v44  ;;  %v1330_v44 = vld [vmem:[%s2090_s6] ss:$0 sm:$0xff] }
  0xc3   : > { %1470 = vmatpush3.bf16.msra.mxu0 %v1623_v41 }
 0x146   : > { %v1359_v14 = vpop.f32.mrf.mxu0 }
 0x148   : > { %v1360_v15 = vpop.f32.mrf.mxu0  ;;  %v1381_v16 = vpop.f32.mrf.mxu1 }
 0x149   : > { %v1361_v26 = vadd.f32 %v1360_v15, %v1359_v14 }
 0x14a   : > { %v1362_v17 = vpop.f32.mrf.mxu0  ;;  %v1382_v18 = vpop.f32.mrf.mxu1 }
 0x14b   : > { %v792_v28 = vadd.f32 %v1361_v26, %v1270_v27  ;;  %v1383_v29 = vadd.f32 %v1382_v18, %v1381_v16 }
 0x14c   : > { %v1363_v19 = vpop.f32.mrf.mxu0  ;;  %v1384_v20 = vpop.f32.mrf.mxu1 }
 0x14d   : > { %v832_v32 = vadd.f32 %v1383_v29, %v792_v28 }
 0x14e   : > { %v1385_v21 = vpop.f32.mrf.mxu1 }
 0x150   : > { %v911_v22 = vpop.f32.mrf.mxu1 }
 0x152   : > { %v1433_v23 = vpop.f32.mrf.mxu1 }
 0x154   : > { %v914_v24 = vpop.f32.mrf.mxu1 }
 0x156   : > { %v1434_v25 = vpop.f32.mrf.mxu1 }
 0x166   : > { %v1403_v30 = vpop.f32.mrf.mxu0 }
 0x168   : > { %v1404_v31 = vpop.f32.mrf.mxu0 }
 0x169   : > { %v1405_v33 = vadd.f32 %v1404_v31, %v1403_v30 }
 0x16a   : > { %v1406_v34 = vpop.f32.mrf.mxu0 }
 0x16b   : > { %v872_v35 = vadd.f32 %v1405_v33, %v832_v32 }
 0x16c   : > { %v1407_v36 = vpop.f32.mrf.mxu0 }
 0x16d   : > { %v912_v37 = vadd.f32 %v911_v22, %v872_v35 }
 0x16f   : > { %v917_v38 = vmax.f32 %v912_v37, 0.0 }
 0x171   : > { %v918_v39 = vpack.c.bf16 %v917_v38, %v917_v38 }
 0x173   : > { %1452 = vmatmul.mubr.bf16.vlgmr.msra.gmra.mxu1 %v918_v39 }
 0x233   : > { %v1024_v43 = vpop.f32.mrf.mxu1 }
 0x234   : > { %v1025_v45 = vadd.f32 %v1321_v42, %v1024_v43 }
 0x235   : > { %v1453_v46 = vpop.f32.mrf.mxu1 }
 0x236   : > { %v1030_v47 = vmax.f32 %v1025_v45, 0.0 }
 0x237   : > { %v1027_v48 = vpop.f32.mrf.mxu1 }
 0x238   : > { %v1031_v49 = vpack.c.bf16 %v1030_v47, %v1030_v47 }
 0x239   : > { %v1454_v50 = vpop.f32.mrf.mxu1 }
 0x23a   : > { %1472 = vmatmul.mubr.bf16.vlgmr.msra.gmra.mxu0 %v1031_v49 }
 0x2fa   : > { %v1137_v51 = vpop.f32.mrf.mxu0 }
 0x2fb   : > { %v1138_v52 = vadd.f32 %v1330_v44, %v1137_v51 }
 0x2fc   : > { %v1473_v53 = vpop.f32.mrf.mxu0 }
 0x2fd   : > { %v1143_v54 = vpack.c.bf16 %v1138_v52, %v1138_v52 }
 0x2fe   : > { %v1140_v55 = vpop.f32.mrf.mxu0 }
 0x2ff   : > { %1144 = vst [vmem:[%s338_s22] sm:$0xf] %v1143_v54 }
 0x300   : > { %v1474_v56 = vpop.f32.mrf.mxu0 }
 0x301   : > { %1743 = shalt.err (!%p1740_p9)
}
 0x302   : > { %s1744_s9 = scalar_lea.hbm %s2041_s15, 64  ;;  %s1748_s29 = scalar_lea.hbm %s2091_s7, 128 }
 0x303   : > { %p1745_p13 = scmp.ne.s32.totalorder %s2041_s15, %s1744_s9  ;;  %p1749_p10 = scmp.lt.s32.totalorder %s2041_s15, %s2091_s7 }
 0x304   : > { %p1750_p11 = scmp.lt.s32.totalorder %s1748_s29, %s1744_s9 }
 0x305   : > { %p1746_p1 = pnand %p1745_p13, %p2113_p6 }
 0x306   : > { %p1751_p2 = por %p1750_p11, %p1749_p10 }
 0x307   : > { %p1747_p8 = pneg %p1746_p1 }
 0x309   : > { %p1752_p4 = pnand %p1751_p2, %p1747_p8 }
 0x30b   : > { %1755 = shalt.err (!%p1752_p4)
}
 0x30c   : > { %1492 = dma.vmem_to_hbm [thread:$0]  (%p2113_p6), %s2043_s16, 64, %s2041_s15, %s1146_s12  }
 0x30d PF: > { %s1171_s23 = sand.u32 1, %s1790_s24   ;;  %p2114_p12 = scmp.ne.s32.totalorder %s2099_s8, 0 }
 0x30e   : > { %p2115_p0 = scmp.ge.s32.totalorder %s1802_s27, 2  ;;  %s1172_s22 = scalar_lea.sflag [#allocation4], %s1171_s23 }
 0x310   : > { %p1509_p5 = pnand %p2115_p0, %p2114_p12 }
 0x312   : > { %p1510_p3 = pneg %p1509_p5 }
 0x314   : > { %1785 = dma.done.wait (%p1510_p3), %s1172_s22, 64  }
 0x315   : > { %1787 = vsyncadd (%p1510_p3), %s1172_s22, 4294967232  ;;  %p22_p7 = scmp.ge.s32.totalorder %s1933_s14, 4   ;;  %s2116_s24 = smov %s1794_s25 }
 0x316   : > { %s2117_s25 = smov %s1798_s26  ;;  %s2118_s26 = smov %s1943_s17 }
 0x317   : > { %s2119_s27 = smov %s1933_s14  ;;  %24 = sbr.rel (!%p22_p7) target bundleno = 10 (0xa), region = 105 }
 0x31c   :  { %1177 = vsyncpa [#allocation3], 1 }
 0x31d   :  { %1179 = vsyncpa [#allocation3 + $0x1], 1 }
 0x31e   :  { %1180 = vsyncpa [#allocation6], 1 }
 0x31f   :  { %1181 = vsyncpa [#allocation9], 1 }
 0x320   :  { %1182 = vsyncpa [#allocation4], 1 }
 0x321   :  { %1184 = vsyncpa [#allocation4 + $0x1], 1 }

</bundles_post_ra>
